<compile_context>
chip_gen: v5e
topology: v5e:2x2
jax: 0.10.0
libtpu: 0.0.40
codegen_flags: <defaults>
</compile_context>

<pallas_src>
import jax
import jax.numpy as jnp
from jax.experimental import pallas as pl
from jax.experimental.pallas import tpu as pltpu

HIDDEN = 32          # stand-in for bert hidden_size (real BERT: 768)
N_PUNC = 5
N_CASE = 4
OUT_W = 16           # packed head width: [punc(5) | case(4) | pad(7)]
                     # == full array last dim -> bypasses the /128 rule.

# Row tile cap: double-buffered bf16 input + f32 GELU scratch + bf16 copy +
# bf16 output stays well inside v7x's 32 MiB scoped-VMEM default even for
# real H=768 (~6 MiB/step); could be raised (with vmem_limit_bytes) on
# v5e/v6e's 128 MiB VMEM.
TILE_M_MAX = 1024


def _cdiv(a, b):
    return -(-a // b)


def _round_up(x, m):
    return _cdiv(x, m) * m


def _heads_kernel(x_ref, w_ref, b_ref, o_ref):
    # x_ref: [tile_m, H] (bf16/f32), w_ref: [H, OUT_W] bf16,
    # b_ref: [1, OUT_W] f32, o_ref: [tile_m, OUT_W] bf16.
    # Activation math in f32 (no bf16 VPU/EUP on v5e); tanh-approx GELU keeps
    # the transcendental on the EUP slot, off the VALU critical path.
    x = x_ref[...].astype(jnp.float32)
    h = jax.nn.gelu(x, approximate=True)
    # dropout(p=0.3) -> identity (eval/inference semantics)
    acc = jnp.dot(h.astype(jnp.bfloat16), w_ref[...],
                  preferred_element_type=jnp.float32)
    o_ref[...] = (acc + b_ref[...]).astype(o_ref.dtype)


def pack_head_params(w_punc, b_punc, w_case, b_case):
    """One-time packing of both heads into a single [H, OUT_W] slab."""
    H = w_punc.shape[0]
    w = jnp.zeros((H, OUT_W), jnp.float32)
    w = w.at[:, :N_PUNC].set(w_punc)
    w = w.at[:, N_PUNC:N_PUNC + N_CASE].set(w_case)
    b = jnp.zeros((1, OUT_W), jnp.float32)
    b = b.at[0, :N_PUNC].set(b_punc)
    b = b.at[0, N_PUNC:N_PUNC + N_CASE].set(b_case)
    return w.astype(jnp.bfloat16), b  # weights bf16 (MXU path), bias f32


@jax.jit
def recase_heads(hidden, w_packed, b_packed):
    """hidden: [B, S, H] (bf16 preferred); w_packed: [H, 16] bf16; b_packed: [1, 16] f32."""
    B, S, H = hidden.shape
    rows = B * S
    x2d = hidden.reshape(rows, H)        # no dtype cast: kernel reads native dtype

    # Even number of grid steps (when >1) so the "parallel" axis balances
    # across v7x's 2 TensorCores; tile rows are a multiple of 8 sublanes.
    steps = _cdiv(rows, TILE_M_MAX)
    if steps > 1 and steps % 2 == 1:
        steps += 1
    tile_m = min(TILE_M_MAX, _round_up(_cdiv(rows, steps), 8))
    grid = (_cdiv(rows, tile_m),)        # ragged last block: OOB reads are
                                         # don't-care, OOB writes are masked.

    in_bytes = jnp.dtype(x2d.dtype).itemsize
    cost = pl.CostEstimate(
        flops=2 * rows * H * OUT_W + 12 * rows * H,
        transcendentals=rows * H,
        bytes_accessed=(rows * H * in_bytes + rows * OUT_W * 2
                        + H * OUT_W * 2 + OUT_W * 4),
    )

    out = pl.pallas_call(
        _heads_kernel,
        out_shape=jax.ShapeDtypeStruct((rows, OUT_W), jnp.bfloat16),
        grid=grid,
        in_specs=[
            pl.BlockSpec((tile_m, H), lambda i: (i, 0)),
            pl.BlockSpec((H, OUT_W), lambda i: (0, 0)),   # resident weights
            pl.BlockSpec((1, OUT_W), lambda i: (0, 0)),   # resident bias
        ],
        out_specs=pl.BlockSpec((tile_m, OUT_W), lambda i: (i, 0)),
        compiler_params=pltpu.CompilerParams(
            dimension_semantics=("parallel",)   # megacore-shardable on v7x
        ),
        cost_estimate=cost,
    )(x2d, w_packed, b_packed)

    # Slice BEFORE casting: only the 9 useful columns are upcast/copied.
    punc = out[:, :N_PUNC].astype(jnp.float32).reshape(B, S, N_PUNC)
    case_ = out[:, N_PUNC:N_PUNC + N_CASE].astype(jnp.float32).reshape(B, S, N_CASE)
    return punc, case_


def reference_heads(hidden, w_punc, b_punc, w_case, b_case):
    # torch F.gelu default is exact (erf-based); f32 reference math.
    h = jax.nn.gelu(hidden.astype(jnp.float32), approximate=False)
    return h @ w_punc + b_punc, h @ w_case + b_case


def _run_case(key, B, S, H, vocab, w_punc, b_punc, w_case, b_case,
              w_packed, b_packed):
    k_emb, k_ids = jax.random.split(key, 2)
    emb_table = jax.random.normal(k_emb, (vocab, H), jnp.float32) * 0.5
    x_ids = jax.random.randint(k_ids, (B, S), 0, vocab, jnp.int32)
    # TODO(synk): pretrained BERT backbone not translated; stand-in produces a
    # bf16 last_hidden_state directly (no extra f32->bf16 HBM pass downstream).
    last_hidden_state = emb_table[x_ids].astype(jnp.bfloat16)

    punc, case_ = recase_heads(last_hidden_state, w_packed, b_packed)
    punc = jax.block_until_ready(punc)
    case_ = jax.block_until_ready(case_)

    punc_ref, case_ref = reference_heads(
        last_hidden_state, w_punc, b_punc, w_case, b_case)

    assert punc.shape == (B, S, N_PUNC) and case_.shape == (B, S, N_CASE)
    # bf16 operands + tanh-approx GELU + bf16 writeback vs f32/erf reference.
    assert jnp.allclose(punc, punc_ref, atol=5e-2, rtol=5e-2)
    assert jnp.allclose(case_, case_ref, atol=5e-2, rtol=5e-2)


if __name__ == "__main__":
    key = jax.random.PRNGKey(0)
    k_wp, k_bp, k_wc, k_bc, k_case1, k_case2 = jax.random.split(key, 6)

    H, VOCAB = HIDDEN, 50

    # Deterministic synthetic head parameters.
    w_punc = jax.random.normal(k_wp, (H, N_PUNC), jnp.float32) * 0.1
    b_punc = jax.random.normal(k_bp, (N_PUNC,), jnp.float32) * 0.1
    w_case = jax.random.normal(k_wc, (H, N_CASE), jnp.float32) * 0.1
    b_case = jax.random.normal(k_bc, (N_CASE,), jnp.float32) * 0.1

    # One-time (hoisted) packing of both heads into a lane-packed slab.
    w_packed, b_packed = pack_head_params(w_punc, b_punc, w_case, b_case)
    w_packed = jax.block_until_ready(w_packed)
    b_packed = jax.block_until_ready(b_packed)

    # Small shape consistent with the module (single tile, single grid step).
    _run_case(k_case1, 2, 8, H, VOCAB,
              w_punc, b_punc, w_case, b_case, w_packed, b_packed)

    # Larger shape exercising the multi-step, ragged-last-block, balanced-grid
    # path (rows=2100 -> 4 steps of 528 rows, last block partially masked).
    _run_case(k_case2, 3, 700, H, VOCAB,
              w_punc, b_punc, w_case, b_case, w_packed, b_packed)

    print("KERNEL_OK")
</pallas_src>

<mosaic_0001>
module attributes {stable_mosaic.version = 11 : i64} {
  func.func @_heads_kernel(%arg0: i32, %arg1: memref<16x32xbf16, #tpu.memory_space<vmem>>, %arg2: memref<32x16xbf16, #tpu.memory_space<vmem>>, %arg3: memref<1x16xf32, #tpu.memory_space<vmem>>, %arg4: memref<16x16xbf16, #tpu.memory_space<vmem>>) attributes {dimension_semantics = [#tpu.dimension_semantics<parallel>], iteration_bounds = array<i64: 1>, scalar_prefetch = 0 : i64, scratch_operands = 0 : i64, tpu.core_type = #tpu.core_type<tc>, window_params = [{transform_indices = @transform_0, window_bounds = array<i64: 16, 32>}, {pipeline_mode = #tpu.pipeline_mode<synchronous>, transform_indices = @transform_1, window_bounds = array<i64: 32, 16>}, {pipeline_mode = #tpu.pipeline_mode<synchronous>, transform_indices = @transform_2, window_bounds = array<i64: 1, 16>}, {transform_indices = @transform_3, window_bounds = array<i64: 16, 16>}]} {
    %c0 = arith.constant 0 : index
    %c0_0 = arith.constant 0 : index
    %0 = vector.load %arg1[%c0, %c0_0] : memref<16x32xbf16, #tpu.memory_space<vmem>>, vector<16x32xbf16>
    %1 = arith.extf %0 : vector<16x32xbf16> to vector<16x32xf32>
    %2 = arith.mulf %1, %1 : vector<16x32xf32>
    %3 = arith.mulf %1, %2 : vector<16x32xf32>
    %cst = arith.constant 4.471500e-02 : f32
    %4 = vector.broadcast %cst : f32 to vector<16x32xf32>
    %5 = arith.mulf %4, %3 : vector<16x32xf32>
    %6 = arith.addf %1, %5 : vector<16x32xf32>
    %cst_1 = arith.constant 0.797884583 : f32
    %7 = vector.broadcast %cst_1 : f32 to vector<16x32xf32>
    %8 = arith.mulf %7, %6 : vector<16x32xf32>
    %9 = math.tanh %8 : vector<16x32xf32>
    %cst_2 = arith.constant 1.000000e+00 : f32
    %10 = vector.broadcast %cst_2 : f32 to vector<16x32xf32>
    %11 = arith.addf %10, %9 : vector<16x32xf32>
    %cst_3 = arith.constant 5.000000e-01 : f32
    %12 = vector.broadcast %cst_3 : f32 to vector<16x32xf32>
    %13 = arith.mulf %12, %11 : vector<16x32xf32>
    %14 = arith.mulf %1, %13 : vector<16x32xf32>
    %15 = arith.truncf %14 : vector<16x32xf32> to vector<16x32xbf16>
    %c0_4 = arith.constant 0 : index
    %c0_5 = arith.constant 0 : index
    %16 = vector.load %arg2[%c0_4, %c0_5] : memref<32x16xbf16, #tpu.memory_space<vmem>>, vector<32x16xbf16>
    %cst_6 = arith.constant dense<0.000000e+00> : vector<16x16xf32>
    %17 = tpu.matmul %15, %16, %cst_6 {dimension_numbers = #tpu.dot_dimension_numbers<[1], [0], [0], [1], [0, 0, 1, 1], [], []>} : vector<16x32xbf16>, vector<32x16xbf16>, vector<16x16xf32> -> vector<16x16xf32>
    %c0_7 = arith.constant 0 : index
    %c0_8 = arith.constant 0 : index
    %18 = vector.load %arg3[%c0_7, %c0_8] : memref<1x16xf32, #tpu.memory_space<vmem>>, vector<1x16xf32>
    %19 = vector.broadcast %18 : vector<1x16xf32> to vector<16x16xf32>
    %20 = arith.addf %17, %19 : vector<16x16xf32>
    %21 = arith.truncf %20 : vector<16x16xf32> to vector<16x16xbf16>
    %c0_9 = arith.constant 0 : index
    %c0_10 = arith.constant 0 : index
    %22 = vector.load %arg4[%c0_9, %c0_10] : memref<16x16xbf16, #tpu.memory_space<vmem>>, vector<16x16xbf16>
    tpu.vector_store %arg4[%c0_9, %c0_10], %21 {strides = array<i32>} : memref<16x16xbf16, #tpu.memory_space<vmem>>, vector<16x16xbf16>,
    return
  }
  func.func @transform_0(%arg0: i32) -> (i32, i32) {
    %c0_i32 = arith.constant 0 : i32
    %c0_i32_0 = arith.constant 0 : i32
    return %arg0, %c0_i32 : i32, i32
  }
  func.func @transform_1(%arg0: i32) -> (i32, i32) {
    %c0_i32 = arith.constant 0 : i32
    %c0_i32_0 = arith.constant 0 : i32
    %c0_i32_1 = arith.constant 0 : i32
    return %c0_i32, %c0_i32_0 : i32, i32
  }
  func.func @transform_2(%arg0: i32) -> (i32, i32) {
    %c0_i32 = arith.constant 0 : i32
    %c0_i32_0 = arith.constant 0 : i32
    %c0_i32_1 = arith.constant 0 : i32
    return %c0_i32, %c0_i32_0 : i32, i32
  }
  func.func @transform_3(%arg0: i32) -> (i32, i32) {
    %c0_i32 = arith.constant 0 : i32
    %c0_i32_0 = arith.constant 0 : i32
    return %arg0, %c0_i32 : i32, i32
  }
}

</mosaic_0001>

<bundles_post_ra>
// kernel: recase_heads.1
= control target key start
LH: loop header
LB: loop body
LE: loop exit
PB: predicated region body
PF: predicated region fallthrough
CT: control target
= control target key end

     0   :  { %vm58_vm0 = vcmask 261120   ;;  %vm78_vm1 = vcmask 125952   ;;  %s143_s1 = inlined_call_operand.vmem [shape: bf16[32,16], index: 1, kind: input, shape index: {}]   ;;  %s144_s0 = inlined_call_operand.vmem [shape: bf16[16,32], index: 0, kind: input, shape index: {}]   ;;  %s145_s2 = inlined_call_operand.vmem [shape: f32[1,16], index: 2, kind: input, shape index: {}]   ;;  %s146_s3 = inlined_call_operand.vmem [shape: bf16[16,16], index: 3, kind: output, shape index: {}]  }
   0x1   :  { %v95_v0 = vld [vmem:[%s143_s1 + $0x8] sm:$0xff]  ;;  %v97_v1 = vld [vmem:[%s144_s0] sm:$0xff]  }
   0x2   :  { %v98_v2 = vunpack.c.l.bf16 %v97_v1  ;;  %v99_v3 = vunpack.c.h.bf16 %v97_v1  ;;  %68 = vmatpush.bf16.msra.mxu0 %v95_v0  ;;  %v94_v4 = vld [vmem:[%s143_s1] sm:$0xff] }
   0x3   :  { %v100_v24 = vld [vmem:[%s145_s2] ss:$0 sm:$0xff] }
   0x4   :  { %v19_v5 = vmul.f32 %v98_v2, %v98_v2  ;;  %v20_v6 = vmul.f32 %v99_v3, %v99_v3 }
   0x6   :  { %v21_v7 = vmul.f32 %v98_v2, %v19_v5  ;;  %v22_v8 = vmul.f32 %v99_v3, %v20_v6  ;;  %69 = vmatpush.bf16.msra.mxu0 %v94_v4 }
   0x8   :  { %v23_v9 = vmul.f32 0.044715, %v21_v7  ;;  %v24_v10 = vmul.f32 0.044715, %v22_v8 }
   0xa   :  { %v25_v11 = vadd.f32 %v98_v2, %v23_v9  ;;  %v26_v12 = vadd.f32 %v99_v3, %v24_v10 }
   0xc   :  { %v27_v13 = vmul.f32 0.7978846, %v25_v11  ;;  %v28_v14 = vmul.f32 0.7978846, %v26_v12 }
   0xe   :  { %101 = vtanh.f32 %v27_v13 }
   0xf   :  { %103 = vtanh.f32 %v28_v14 }
  0x14   :  { %v102_v15 = vpop.eup %101 }
  0x15   :  { %v104_v16 = vpop.eup %103  ;;  %v31_v17 = vadd.f32 1.0, %v102_v15 }
  0x16   :  { %v32_v18 = vadd.f32 1.0, %v104_v16 }
  0x17   :  { %v33_v19 = vmul.f32 0.5, %v31_v17 }
  0x18   :  { %v34_v20 = vmul.f32 0.5, %v32_v18 }
  0x19   :  { %v35_v21 = vmul.f32 %v98_v2, %v33_v19 }
  0x1a   :  { %v36_v22 = vmul.f32 %v99_v3, %v34_v20 }
  0x1c   :  { %v37_v23 = vpack.c.bf16 %v36_v22, %v35_v21 }
  0x1e   :  { %93 = vmatmul.msk.bf16.vlgmr.msra.gmra.mxu0 %vm58_vm0, %v37_v23 }
  0x9b   :  { %v71_v25 = vpop.f32.mrf.mxu0 }
  0x9c   :  { %v72_v26 = vadd.f32 %v100_v24, %v71_v25 }
  0x9e   :  { %v76_v27 = vpack.c.bf16 %v72_v26, %v72_v26 }
  0xa0   :  { %79 = vst.msk [vmem:[%s146_s3] sm:$0xf] %vm78_vm1, %v76_v27 }
  0xa3   :  { %v73_v28 = vpop.f32.mrf.mxu0 }
  0xa4   :  { %v74_v29 = vadd.f32 %v100_v24, %v73_v28 }
  0xa6   :  { %v77_v30 = vpack.c.bf16 %v74_v29, %v74_v29 }
  0xa8   :  { %80 = vst.msk [vmem:[%s146_s3 + $0x4] sm:$0xf] %vm78_vm1, %v77_v30 }

</bundles_post_ra>
